<compile_context>
chip_gen: v7x
topology: tpu7x:2x2x1
jax: 0.10.0
libtpu: 0.0.40
codegen_flags: <defaults>
</compile_context>

<pallas_src>
import functools

import jax
import jax.numpy as jnp
from jax.experimental import pallas as pl
from jax.experimental.pallas import tpu as pltpu

SSL_DIM = 1024          # ssl_model.out_dim
HID = 128               # LL out / BackEnd in/out dim
NUM_CLASSES = 2
CLASS_PAD = 128         # utt-level classifier padded to a lane-aligned width
NEG_SLOPE = 0.01        # nn.LeakyReLU default negative_slope
FRAME_LEN = 128         # stand-in "conv feature extractor" frame size

assert CLASS_PAD == HID  # bias packing below relies on equal lane widths


def _leaky(v):
    # LeakyReLU: for slope < 1 this is exactly max(v, slope*v); one VALU op.
    return jnp.maximum(v, NEG_SLOPE * v)


def model_kernel(frames_ref, w_comb_ref, w1_ref, w2_ref, w3_ref,
                 biases_ref, w_utt_ref,
                 feats_ref, emb_ref, logp_ref,
                 acc_ref, *, total_frames, tile_rows, needs_mask):
    t = pl.program_id(1)
    n_t = pl.num_programs(1)

    @pl.when(t == 0)
    def _init():
        acc_ref[...] = jnp.zeros_like(acc_ref)

    # Packed biases: row 0=b_ll, 1=b1, 2=b2, 3=b3, 4=padded b_utt.
    b_all = biases_ref[...]                                 # (8, HID) f32
    b_ll = b_all[0:1, :]
    b1 = b_all[1:2, :]
    b2 = b_all[2:3, :]
    b3 = b_all[3:4, :]

    # frames_ref: (tile_rows, FRAME_LEN) f32 -> bf16 operand for the MXU.
    xb = frames_ref[...].astype(jnp.bfloat16)

    # TODO(synk): the real XLSR-300M wav2vec2 conv feature extractor needs a
    # pretrained checkpoint; it is replaced by a deterministic *linear* frame
    # projection, which is why SSL and LL fuse into one (128,128) weight.
    # Revert to separate w_ssl / w_ll matmuls when the real SSL model lands.
    h = jnp.dot(xb, w_comb_ref[...],
                preferred_element_type=jnp.float32) + b_ll  # (tT, HID) f32

    # feats returned pre-ReLU (matches `feats = x` before nn.ReLU()).
    feats_ref[...] = h.astype(feats_ref.dtype)              # bf16 writeback

    # ReLU
    h = jnp.maximum(h, 0.0)

    # BackEnd frame-level: 3 x (Linear + LeakyReLU + Dropout)
    # TODO(synk): Dropout treated as identity (deterministic forward).
    h = _leaky(jnp.dot(h.astype(jnp.bfloat16), w1_ref[...],
                       preferred_element_type=jnp.float32) + b1)
    h = _leaky(jnp.dot(h.astype(jnp.bfloat16), w2_ref[...],
                       preferred_element_type=jnp.float32) + b2)
    h = _leaky(jnp.dot(h.astype(jnp.bfloat16), w3_ref[...],
                       preferred_element_type=jnp.float32) + b3)

    if needs_mask:
        # Zero the zero-padded tail rows before they enter the frame sum.
        row_ids = jax.lax.broadcasted_iota(jnp.int32, (tile_rows, 1), 0) \
                  + t * tile_rows
        h = jnp.where(row_ids < total_frames, h, 0.0)

    # Partial sums per sublane group (vreg-wise adds, no XLU); the
    # cross-sublane 8->1 reduce is deferred to the epilogue.
    acc_ref[...] += jnp.sum(h.reshape(tile_rows // 8, 8, HID), axis=0)

    @pl.when(t == n_t - 1)
    def _epilogue():
        emb = jnp.sum(acc_ref[...], axis=0, keepdims=True) \
              * (1.0 / float(total_frames))                  # (1, HID) f32
        emb_ref[...] = emb

        # utt-level classifier + log_softmax in f32 (-1e30 pad bias masks the
        # 126 padded classes; not representable in bf16).
        logits = jnp.dot(emb, w_utt_ref[...],
                         preferred_element_type=jnp.float32) + b_all[4:5, :]
        m = jnp.max(logits, axis=-1, keepdims=True)
        z = logits - m
        lse = jnp.log(jnp.sum(jnp.exp(z), axis=-1, keepdims=True))
        logp_ref[...] = z - lse


def init_params(key):
    ks = jax.random.split(key, 10)

    def lin(k, fan_in, shape):
        return (jax.random.normal(k, shape, jnp.float32)
                / jnp.sqrt(fan_in)).astype(jnp.float32)

    w_utt = lin(ks[8], HID, (HID, NUM_CLASSES))
    b_utt = jax.random.normal(ks[9], (1, NUM_CLASSES), jnp.float32) * 0.01
    w_utt_pad = jnp.zeros((HID, CLASS_PAD), jnp.float32).at[:, :NUM_CLASSES].set(w_utt)
    b_utt_pad = jnp.full((1, CLASS_PAD), -1e30, jnp.float32).at[:, :NUM_CLASSES].set(b_utt)

    return dict(
        w_ssl=lin(ks[0], FRAME_LEN, (FRAME_LEN, SSL_DIM)),
        w_ll=lin(ks[1], SSL_DIM, (SSL_DIM, HID)),
        b_ll=jax.random.normal(ks[2], (1, HID), jnp.float32) * 0.01,
        w1=lin(ks[3], HID, (HID, HID)),
        b1=jnp.zeros((1, HID), jnp.float32),
        w2=lin(ks[4], HID, (HID, HID)),
        b2=jnp.zeros((1, HID), jnp.float32),
        w3=lin(ks[5], HID, (HID, HID)),
        b3=jnp.zeros((1, HID), jnp.float32),
        w_utt_pad=w_utt_pad,
        b_utt_pad=b_utt_pad,
    )


def _choose_tile(T, desired):
    """Bounded, sublane-aligned tile; tail handled by padding + masking."""
    t_round = -(-T // 8) * 8                   # single-tile (full-extent) size
    desired = max(16, (desired // 16) * 16)    # bf16 feats: keep multiple of 16
    return t_round if t_round <= desired else desired


def model_forward(x_big, params, tile_rows=1024):
    # PyTorch train path: x_big.squeeze(0).transpose(0, 1) -> (B, L).
    # Kept as a one-time XLA relayout: folding it into the tile DMA would make
    # the lane dim = B (masked, heavily strided DMA) — strictly worse.
    x = jnp.transpose(jnp.squeeze(x_big, axis=0), (1, 0))
    B, L = x.shape
    T = L // FRAME_LEN
    if T < 1:
        raise ValueError("input waveform shorter than one frame")
    frames = x[:, :T * FRAME_LEN].reshape(B, T, FRAME_LEN)

    tT = _choose_tile(T, tile_rows)
    n_t = pl.cdiv(T, tT)
    T_pad = n_t * tT
    if T_pad != T:
        frames = jnp.pad(frames, ((0, 0), (0, T_pad - T), (0, 0)))

    bf = jnp.bfloat16
    # TODO(synk): this fusion is only valid while the SSL extractor is a
    # linear stand-in; revert when the real wav2vec2 conv stack is used.
    w_comb = jnp.dot(params['w_ssl'], params['w_ll'],
                     preferred_element_type=jnp.float32).astype(bf)  # (128,128)
    w1 = params['w1'].astype(bf)
    w2 = params['w2'].astype(bf)
    w3 = params['w3'].astype(bf)

    # Pack all (1,128) biases into a single (8,128) input tile.
    biases = jnp.zeros((8, HID), jnp.float32)
    biases = biases.at[0].set(params['b_ll'][0])
    biases = biases.at[1].set(params['b1'][0])
    biases = biases.at[2].set(params['b2'][0])
    biases = biases.at[3].set(params['b3'][0])
    biases = biases.at[4].set(params['b_utt_pad'][0])

    def const_spec(shape):
        n = len(shape)
        return pl.BlockSpec(shape, lambda b, t, _n=n: (0,) * _n)

    in_specs = [
        pl.BlockSpec((None, tT, FRAME_LEN), lambda b, t: (b, t, 0)),   # frames
        const_spec((FRAME_LEN, HID)),                                  # w_comb (bf16)
        const_spec((HID, HID)),                                        # w1
        const_spec((HID, HID)),                                        # w2
        const_spec((HID, HID)),                                        # w3
        const_spec((8, HID)),                                          # packed biases
        const_spec((HID, CLASS_PAD)),                                  # w_utt (f32)
    ]
    out_specs = (
        pl.BlockSpec((None, tT, HID), lambda b, t: (b, t, 0)),         # feats
        pl.BlockSpec((None, 1, HID), lambda b, t: (b, 0, 0)),          # emb  (resident over t)
        pl.BlockSpec((None, 1, CLASS_PAD), lambda b, t: (b, 0, 0)),    # logp (resident over t)
    )
    out_shape = (
        jax.ShapeDtypeStruct((B, T_pad, HID), jnp.bfloat16),
        jax.ShapeDtypeStruct((B, 1, HID), jnp.float32),
        jax.ShapeDtypeStruct((B, 1, CLASS_PAD), jnp.float32),
    )

    weight_bytes = ((int(w_comb.size) + int(w1.size) + int(w2.size) + int(w3.size)) * 2
                    + int(biases.size) * 4 + int(params['w_utt_pad'].size) * 4)
    cost = pl.CostEstimate(
        flops=2 * B * T_pad * (FRAME_LEN * HID + 3 * HID * HID)
              + 2 * B * HID * CLASS_PAD,
        transcendentals=B * (CLASS_PAD + 1),
        bytes_accessed=int(frames.size) * 4            # waveform frames (f32)
                       + B * T_pad * HID * 2           # feats (bf16)
                       + B * HID * 4 + B * CLASS_PAD * 4 + weight_bytes,
    )

    grid_spec = pltpu.PrefetchScalarGridSpec(
        num_scalar_prefetch=0,
        grid=(B, n_t),
        in_specs=in_specs,
        out_specs=out_specs,
        scratch_shapes=[pltpu.VMEM((8, HID), jnp.float32)],   # frame-sum accumulator
    )

    feats_pad, emb3, logp3 = pl.pallas_call(
        functools.partial(model_kernel, total_frames=T, tile_rows=tT,
                          needs_mask=(T_pad != T)),
        out_shape=out_shape,
        grid_spec=grid_spec,
        compiler_params=pltpu.CompilerParams(
            dimension_semantics=("parallel", "arbitrary"),
            vmem_limit_bytes=32 * 1024 * 1024,
        ),
        cost_estimate=cost,
    )(frames, w_comb, w1, w2, w3, biases, params['w_utt_pad'])

    feats = feats_pad[:, :T, :] if T_pad != T else feats_pad   # (B, T, 128) bf16
    output = logp3[:, 0, :NUM_CLASSES]                         # (B, 2) log-softmax
    emb = emb3[:, 0, :]                                        # (B, 128)
    return output, feats, emb


if __name__ == "__main__":
    key = jax.random.PRNGKey(0)
    k_x, k_p = jax.random.split(key)

    B = 2
    T_true = 10
    L = T_true * FRAME_LEN + 37       # non-multiple length -> exercises tail masking
    # Input layout matches train-mode forward: (1, wave_len, batch)
    x_big = jax.random.normal(k_x, (1, L, B), jnp.float32)

    params = init_params(k_p)

    output, feats, emb = jax.block_until_ready(model_forward(x_big, params))

    # Shape / sanity checks.
    assert output.shape == (B, NUM_CLASSES)
    assert feats.shape == (B, T_true, HID)
    assert emb.shape == (B, HID)
    assert bool(jnp.all(jnp.abs(jnp.sum(jnp.exp(output), axis=-1) - 1.0) < 1e-3))

    # Pure-JAX reference using the same bf16-operand / f32-accumulate path.
    x = jnp.transpose(jnp.squeeze(x_big, axis=0), (1, 0))
    frames_ref = x[:, :T_true * FRAME_LEN].reshape(B, T_true, FRAME_LEN)
    bf = jnp.bfloat16
    w_comb_ref = jnp.dot(params['w_ssl'], params['w_ll'],
                         preferred_element_type=jnp.float32).astype(bf)
    h = jnp.einsum('btf,fh->bth', frames_ref.astype(bf), w_comb_ref,
                   preferred_element_type=jnp.float32) + params['b_ll']
    feats_ref_f32 = h
    h = jnp.maximum(h, 0.0)
    for w, b in ((params['w1'], params['b1']),
                 (params['w2'], params['b2']),
                 (params['w3'], params['b3'])):
        h = jnp.einsum('bth,hk->btk', h.astype(bf), w.astype(bf),
                       preferred_element_type=jnp.float32) + b
        h = jnp.maximum(h, NEG_SLOPE * h)
    emb_ref = jnp.mean(h, axis=1)
    logits_ref = emb_ref @ params['w_utt_pad'] + params['b_utt_pad']
    out_ref = jax.nn.log_softmax(logits_ref, axis=-1)[:, :NUM_CLASSES]

    assert bool(jnp.allclose(output, out_ref, atol=2e-2)), "output mismatch"
    assert bool(jnp.allclose(emb, emb_ref, atol=2e-2, rtol=2e-2)), "emb mismatch"
    assert bool(jnp.allclose(feats.astype(jnp.float32), feats_ref_f32,
                             atol=5e-2, rtol=5e-2)), "feats mismatch"

    print("KERNEL_OK")
</pallas_src>

<mosaic_0001>
module attributes {stable_mosaic.version = 11 : i64} {
  func.func @model_kernel(%arg0: i32, %arg1: i32, %arg2: memref<1x16x128xf32, #tpu.memory_space<vmem>>, %arg3: memref<128x128xbf16, #tpu.memory_space<vmem>>, %arg4: memref<128x128xbf16, #tpu.memory_space<vmem>>, %arg5: memref<128x128xbf16, #tpu.memory_space<vmem>>, %arg6: memref<128x128xbf16, #tpu.memory_space<vmem>>, %arg7: memref<8x128xf32, #tpu.memory_space<vmem>>, %arg8: memref<128x128xf32, #tpu.memory_space<vmem>>, %arg9: memref<1x16x128xbf16, #tpu.memory_space<vmem>>, %arg10: memref<1x1x128xf32, #tpu.memory_space<vmem>>, %arg11: memref<1x1x128xf32, #tpu.memory_space<vmem>>, %arg12: memref<8x128xf32, #tpu.memory_space<vmem>>) attributes {dimension_semantics = [#tpu.dimension_semantics<parallel>, #tpu.dimension_semantics<arbitrary>], iteration_bounds = array<i64: 2, 1>, scalar_prefetch = 0 : i64, scratch_operands = 1 : i64, tpu.core_type = #tpu.core_type<tc>, window_params = [{transform_indices = @transform_0, window_bounds = array<i64: 1, 16, 128>}, {pipeline_mode = #tpu.pipeline_mode<synchronous>, transform_indices = @transform_1, window_bounds = array<i64: 128, 128>}, {pipeline_mode = #tpu.pipeline_mode<synchronous>, transform_indices = @transform_2, window_bounds = array<i64: 128, 128>}, {pipeline_mode = #tpu.pipeline_mode<synchronous>, transform_indices = @transform_3, window_bounds = array<i64: 128, 128>}, {pipeline_mode = #tpu.pipeline_mode<synchronous>, transform_indices = @transform_4, window_bounds = array<i64: 128, 128>}, {pipeline_mode = #tpu.pipeline_mode<synchronous>, transform_indices = @transform_5, window_bounds = array<i64: 8, 128>}, {pipeline_mode = #tpu.pipeline_mode<synchronous>, transform_indices = @transform_6, window_bounds = array<i64: 128, 128>}, {transform_indices = @transform_7, window_bounds = array<i64: 1, 16, 128>}, {transform_indices = @transform_8, window_bounds = array<i64: 1, 1, 128>}, {transform_indices = @transform_9, window_bounds = array<i64: 1, 1, 128>}]} {
    %c0_i32 = arith.constant 0 : i32
    %0 = arith.cmpi eq, %arg1, %c0_i32 : i32
    %1 = arith.extui %0 : i1 to i32
    %c0_i32_0 = arith.constant 0 : i32
    %2 = arith.cmpi ne, %1, %c0_i32_0 : i32
    scf.if %2 {
      %cst_31 = arith.constant 0.000000e+00 : f32
      %63 = vector.broadcast %cst_31 : f32 to vector<8x128xf32>
      %c0_32 = arith.constant 0 : index
      %c0_33 = arith.constant 0 : index
      %64 = vector.load %arg12[%c0_32, %c0_33] : memref<8x128xf32, #tpu.memory_space<vmem>>, vector<8x128xf32>
      tpu.vector_store %arg12[%c0_32, %c0_33], %63 {strides = array<i32>} : memref<8x128xf32, #tpu.memory_space<vmem>>, vector<8x128xf32>,
    } else {
    }
    %c0 = arith.constant 0 : index
    %c0_1 = arith.constant 0 : index
    %3 = vector.load %arg7[%c0, %c0_1] : memref<8x128xf32, #tpu.memory_space<vmem>>, vector<8x128xf32>
    %4 = vector.extract_strided_slice %3 {offsets = [0, 0], sizes = [1, 128], strides = [1, 1]} : vector<8x128xf32> to vector<1x128xf32>
    %5 = vector.extract_strided_slice %3 {offsets = [1, 0], sizes = [1, 128], strides = [1, 1]} : vector<8x128xf32> to vector<1x128xf32>
    %6 = vector.extract_strided_slice %3 {offsets = [2, 0], sizes = [1, 128], strides = [1, 1]} : vector<8x128xf32> to vector<1x128xf32>
    %7 = vector.extract_strided_slice %3 {offsets = [3, 0], sizes = [1, 128], strides = [1, 1]} : vector<8x128xf32> to vector<1x128xf32>
    %c0_2 = arith.constant 0 : index
    %c0_3 = arith.constant 0 : index
    %c0_4 = arith.constant 0 : index
    %8 = vector.load %arg2[%c0_2, %c0_3, %c0_4] : memref<1x16x128xf32, #tpu.memory_space<vmem>>, vector<1x16x128xf32>
    %9 = vector.shape_cast %8 : vector<1x16x128xf32> to vector<16x128xf32>
    %10 = arith.truncf %9 : vector<16x128xf32> to vector<16x128xbf16>
    %c0_5 = arith.constant 0 : index
    %c0_6 = arith.constant 0 : index
    %11 = vector.load %arg3[%c0_5, %c0_6] : memref<128x128xbf16, #tpu.memory_space<vmem>>, vector<128x128xbf16>
    %cst = arith.constant dense<0.000000e+00> : vector<16x128xf32>
    %12 = tpu.matmul %10, %11, %cst {dimension_numbers = #tpu.dot_dimension_numbers<[1], [0], [0], [1], [0, 0, 1, 1], [], []>} : vector<16x128xbf16>, vector<128x128xbf16>, vector<16x128xf32> -> vector<16x128xf32>
    %13 = vector.broadcast %4 : vector<1x128xf32> to vector<16x128xf32>
    %14 = arith.addf %12, %13 : vector<16x128xf32>
    %15 = arith.truncf %14 : vector<16x128xf32> to vector<16x128xbf16>
    %c0_7 = arith.constant 0 : index
    %c0_8 = arith.constant 0 : index
    %c0_9 = arith.constant 0 : index
    %16 = vector.load %arg9[%c0_7, %c0_8, %c0_9] : memref<1x16x128xbf16, #tpu.memory_space<vmem>>, vector<1x16x128xbf16>
    %17 = vector.shape_cast %16 : vector<1x16x128xbf16> to vector<16x128xbf16>
    %18 = vector.shape_cast %15 : vector<16x128xbf16> to vector<1x16x128xbf16>
    tpu.vector_store %arg9[%c0_7, %c0_8, %c0_9], %18 {strides = array<i32>} : memref<1x16x128xbf16, #tpu.memory_space<vmem>>, vector<1x16x128xbf16>,
    %cst_10 = arith.constant 0.000000e+00 : f32
    %19 = vector.broadcast %cst_10 : f32 to vector<16x128xf32>
    %20 = arith.maximumf %14, %19 : vector<16x128xf32>
    %21 = arith.truncf %20 : vector<16x128xf32> to vector<16x128xbf16>
    %c0_11 = arith.constant 0 : index
    %c0_12 = arith.constant 0 : index
    %22 = vector.load %arg4[%c0_11, %c0_12] : memref<128x128xbf16, #tpu.memory_space<vmem>>, vector<128x128xbf16>
    %cst_13 = arith.constant dense<0.000000e+00> : vector<16x128xf32>
    %23 = tpu.matmul %21, %22, %cst_13 {dimension_numbers = #tpu.dot_dimension_numbers<[1], [0], [0], [1], [0, 0, 1, 1], [], []>} : vector<16x128xbf16>, vector<128x128xbf16>, vector<16x128xf32> -> vector<16x128xf32>
    %24 = vector.broadcast %5 : vector<1x128xf32> to vector<16x128xf32>
    %25 = arith.addf %23, %24 : vector<16x128xf32>
    %cst_14 = arith.constant 0.00999999977 : f32
    %26 = vector.broadcast %cst_14 : f32 to vector<16x128xf32>
    %27 = arith.mulf %26, %25 : vector<16x128xf32>
    %28 = arith.maximumf %25, %27 : vector<16x128xf32>
    %29 = arith.truncf %28 : vector<16x128xf32> to vector<16x128xbf16>
    %c0_15 = arith.constant 0 : index
    %c0_16 = arith.constant 0 : index
    %30 = vector.load %arg5[%c0_15, %c0_16] : memref<128x128xbf16, #tpu.memory_space<vmem>>, vector<128x128xbf16>
    %cst_17 = arith.constant dense<0.000000e+00> : vector<16x128xf32>
    %31 = tpu.matmul %29, %30, %cst_17 {dimension_numbers = #tpu.dot_dimension_numbers<[1], [0], [0], [1], [0, 0, 1, 1], [], []>} : vector<16x128xbf16>, vector<128x128xbf16>, vector<16x128xf32> -> vector<16x128xf32>
    %32 = vector.broadcast %6 : vector<1x128xf32> to vector<16x128xf32>
    %33 = arith.addf %31, %32 : vector<16x128xf32>
    %cst_18 = arith.constant 0.00999999977 : f32
    %34 = vector.broadcast %cst_18 : f32 to vector<16x128xf32>
    %35 = arith.mulf %34, %33 : vector<16x128xf32>
    %36 = arith.maximumf %33, %35 : vector<16x128xf32>
    %37 = arith.truncf %36 : vector<16x128xf32> to vector<16x128xbf16>
    %c0_19 = arith.constant 0 : index
    %c0_20 = arith.constant 0 : index
    %38 = vector.load %arg6[%c0_19, %c0_20] : memref<128x128xbf16, #tpu.memory_space<vmem>>, vector<128x128xbf16>
    %cst_21 = arith.constant dense<0.000000e+00> : vector<16x128xf32>
    %39 = tpu.matmul %37, %38, %cst_21 {dimension_numbers = #tpu.dot_dimension_numbers<[1], [0], [0], [1], [0, 0, 1, 1], [], []>} : vector<16x128xbf16>, vector<128x128xbf16>, vector<16x128xf32> -> vector<16x128xf32>
    %40 = vector.broadcast %7 : vector<1x128xf32> to vector<16x128xf32>
    %41 = arith.addf %39, %40 : vector<16x128xf32>
    %cst_22 = arith.constant 0.00999999977 : f32
    %42 = vector.broadcast %cst_22 : f32 to vector<16x128xf32>
    %43 = arith.mulf %42, %41 : vector<16x128xf32>
    %44 = arith.maximumf %41, %43 : vector<16x128xf32>
    %45 = tpu.iota {dimensions = array<i32: 0>} : vector<16x1xi32>
    %c16_i32 = arith.constant 16 : i32
    %46 = arith.muli %arg1, %c16_i32 : i32
    %47 = vector.broadcast %46 : i32 to vector<16x1xi32>
    %48 = arith.addi %45, %47 : vector<16x1xi32>
    %c10_i32 = arith.constant 10 : i32
    %49 = vector.broadcast %c10_i32 : i32 to vector<16x1xi32>
    %50 = arith.cmpi slt, %48, %49 : vector<16x1xi32>
    %cst_23 = arith.constant 0.000000e+00 : f32
    %51 = vector.shape_cast %50 : vector<16x1xi1> to vector<16x1xi1>
    %52 = vector.broadcast %51 : vector<16x1xi1> to vector<16x128xi1>
    %53 = vector.broadcast %cst_23 : f32 to vector<16x128xf32>
    %54 = arith.select %52, %44, %53 : vector<16x128xi1>, vector<16x128xf32>
    %c0_24 = arith.constant 0 : index
    %c0_25 = arith.constant 0 : index
    %55 = vector.load %arg12[%c0_24, %c0_25] : memref<8x128xf32, #tpu.memory_space<vmem>>, vector<8x128xf32>
    %56 = vector.shape_cast %54 : vector<16x128xf32> to vector<2x8x128xf32>
    %cst_26 = arith.constant dense<0.000000e+00> : vector<8x128xf32>
    %57 = vector.multi_reduction <add>, %56, %cst_26 [0] : vector<2x8x128xf32> to vector<8x128xf32>
    %58 = arith.addf %55, %57 : vector<8x128xf32>
    %c0_27 = arith.constant 0 : index
    %c0_28 = arith.constant 0 : index
    %59 = vector.load %arg12[%c0_27, %c0_28] : memref<8x128xf32, #tpu.memory_space<vmem>>, vector<8x128xf32>
    tpu.vector_store %arg12[%c0_27, %c0_28], %58 {strides = array<i32>} : memref<8x128xf32, #tpu.memory_space<vmem>>, vector<8x128xf32>,
    %c0_i32_29 = arith.constant 0 : i32
    %60 = arith.cmpi eq, %arg1, %c0_i32_29 : i32
    %61 = arith.extui %60 : i1 to i32
    %c0_i32_30 = arith.constant 0 : i32
    %62 = arith.cmpi ne, %61, %c0_i32_30 : i32
    scf.if %62 {
      %c0_31 = arith.constant 0 : index
      %c0_32 = arith.constant 0 : index
      %63 = vector.load %arg12[%c0_31, %c0_32] : memref<8x128xf32, #tpu.memory_space<vmem>>, vector<8x128xf32>
      %cst_33 = arith.constant dense<0.000000e+00> : vector<128xf32>
      %64 = vector.multi_reduction <add>, %63, %cst_33 [0] : vector<8x128xf32> to vector<128xf32>
      %65 = vector.shape_cast %64 : vector<128xf32> to vector<1x128xf32>
      %cst_34 = arith.constant 1.000000e-01 : f32
      %66 = vector.broadcast %cst_34 : f32 to vector<1x128xf32>
      %67 = arith.mulf %65, %66 : vector<1x128xf32>
      %c0_35 = arith.constant 0 : index
      %c0_36 = arith.constant 0 : index
      %c0_37 = arith.constant 0 : index
      %68 = vector.load %arg10[%c0_35, %c0_36, %c0_37] : memref<1x1x128xf32, #tpu.memory_space<vmem>>, vector<1x1x128xf32>
      %69 = vector.shape_cast %68 : vector<1x1x128xf32> to vector<1x128xf32>
      %70 = vector.shape_cast %67 : vector<1x128xf32> to vector<1x1x128xf32>
      tpu.vector_store %arg10[%c0_35, %c0_36, %c0_37], %70 {strides = array<i32>} : memref<1x1x128xf32, #tpu.memory_space<vmem>>, vector<1x1x128xf32>,
      %c0_38 = arith.constant 0 : index
      %c0_39 = arith.constant 0 : index
      %71 = vector.load %arg8[%c0_38, %c0_39] : memref<128x128xf32, #tpu.memory_space<vmem>>, vector<128x128xf32>
      %cst_40 = arith.constant dense<0.000000e+00> : vector<1x128xf32>
      %72 = tpu.matmul %67, %71, %cst_40 {dimension_numbers = #tpu.dot_dimension_numbers<[1], [0], [0], [1], [0, 0, 1, 1], [], []>} : vector<1x128xf32>, vector<128x128xf32>, vector<1x128xf32> -> vector<1x128xf32>
      %73 = vector.extract_strided_slice %3 {offsets = [4, 0], sizes = [1, 128], strides = [1, 1]} : vector<8x128xf32> to vector<1x128xf32>
      %74 = arith.addf %72, %73 : vector<1x128xf32>
      %cst_41 = arith.constant dense<0xFF800000> : vector<1xf32>
      %75 = vector.multi_reduction <maximumf>, %74, %cst_41 [1] : vector<1x128xf32> to vector<1xf32>
      %76 = vector.shape_cast %75 : vector<1xf32> to vector<1x1xf32>
      %77 = vector.broadcast %76 : vector<1x1xf32> to vector<1x128xf32>
      %78 = arith.subf %74, %77 : vector<1x128xf32>
      %79 = math.exp %78 : vector<1x128xf32>
      %cst_42 = arith.constant dense<0.000000e+00> : vector<1xf32>
      %80 = vector.multi_reduction <add>, %79, %cst_42 [1] : vector<1x128xf32> to vector<1xf32>
      %81 = vector.shape_cast %80 : vector<1xf32> to vector<1x1xf32>
      %82 = math.log %81 : vector<1x1xf32>
      %83 = vector.broadcast %82 : vector<1x1xf32> to vector<1x128xf32>
      %84 = arith.subf %78, %83 : vector<1x128xf32>
      %c0_43 = arith.constant 0 : index
      %c0_44 = arith.constant 0 : index
      %c0_45 = arith.constant 0 : index
      %85 = vector.load %arg11[%c0_43, %c0_44, %c0_45] : memref<1x1x128xf32, #tpu.memory_space<vmem>>, vector<1x1x128xf32>
      %86 = vector.shape_cast %85 : vector<1x1x128xf32> to vector<1x128xf32>
      %87 = vector.shape_cast %84 : vector<1x128xf32> to vector<1x1x128xf32>
      tpu.vector_store %arg11[%c0_43, %c0_44, %c0_45], %87 {strides = array<i32>} : memref<1x1x128xf32, #tpu.memory_space<vmem>>, vector<1x1x128xf32>,
    } else {
    }
    return
  }
  func.func @transform_0(%arg0: i32, %arg1: i32) -> (i32, i32, i32) {
    %c0_i32 = arith.constant 0 : i32
    %c0_i32_0 = arith.constant 0 : i32
    return %arg0, %arg1, %c0_i32 : i32, i32, i32
  }
  func.func @transform_1(%arg0: i32, %arg1: i32) -> (i32, i32) {
    %c0_i32 = arith.constant 0 : i32
    %c0_i32_0 = arith.constant 0 : i32
    %c0_i32_1 = arith.constant 0 : i32
    return %c0_i32, %c0_i32_0 : i32, i32
  }
  func.func @transform_2(%arg0: i32, %arg1: i32) -> (i32, i32) {
    %c0_i32 = arith.constant 0 : i32
    %c0_i32_0 = arith.constant 0 : i32
    %c0_i32_1 = arith.constant 0 : i32
    return %c0_i32, %c0_i32_0 : i32, i32
  }
  func.func @transform_3(%arg0: i32, %arg1: i32) -> (i32, i32) {
    %c0_i32 = arith.constant 0 : i32
    %c0_i32_0 = arith.constant 0 : i32
    %c0_i32_1 = arith.constant 0 : i32
    return %c0_i32, %c0_i32_0 : i32, i32
  }
  func.func @transform_4(%arg0: i32, %arg1: i32) -> (i32, i32) {
    %c0_i32 = arith.constant 0 : i32
    %c0_i32_0 = arith.constant 0 : i32
    %c0_i32_1 = arith.constant 0 : i32
    return %c0_i32, %c0_i32_0 : i32, i32
  }
  func.func @transform_5(%arg0: i32, %arg1: i32) -> (i32, i32) {
    %c0_i32 = arith.constant 0 : i32
    %c0_i32_0 = arith.constant 0 : i32
    %c0_i32_1 = arith.constant 0 : i32
    return %c0_i32, %c0_i32_0 : i32, i32
  }
  func.func @transform_6(%arg0: i32, %arg1: i32) -> (i32, i32) {
    %c0_i32 = arith.constant 0 : i32
    %c0_i32_0 = arith.constant 0 : i32
    %c0_i32_1 = arith.constant 0 : i32
    return %c0_i32, %c0_i32_0 : i32, i32
  }
  func.func @transform_7(%arg0: i32, %arg1: i32) -> (i32, i32, i32) {
    %c0_i32 = arith.constant 0 : i32
    %c0_i32_0 = arith.constant 0 : i32
    return %arg0, %arg1, %c0_i32 : i32, i32, i32
  }
  func.func @transform_8(%arg0: i32, %arg1: i32) -> (i32, i32, i32) {
    %c0_i32 = arith.constant 0 : i32
    %c0_i32_0 = arith.constant 0 : i32
    %c0_i32_1 = arith.constant 0 : i32
    return %arg0, %c0_i32, %c0_i32_0 : i32, i32, i32
  }
  func.func @transform_9(%arg0: i32, %arg1: i32) -> (i32, i32, i32) {
    %c0_i32 = arith.constant 0 : i32
    %c0_i32_0 = arith.constant 0 : i32
    %c0_i32_1 = arith.constant 0 : i32
    return %arg0, %c0_i32, %c0_i32_0 : i32, i32, i32
  }
}

</mosaic_0001>

<bundles_post_ra>
// kernel: tpu_custom_call.1
= control target key start
LH: loop header
LB: loop body
LE: loop exit
PB: predicated region body
PF: predicated region fallthrough
CT: control target
= control target key end

     0   :  { %s2597_s0 = inlined_call_operand.hbm [shape: f32[2,16,128], index: 0, kind: input, shape index: {}]   ;;  %s2598_s1 = inlined_call_operand.hbm [shape: bf16[128,128], index: 1, kind: input, shape index: {}]   ;;  %s2599_s2 = inlined_call_operand.hbm [shape: bf16[128,128], index: 2, kind: input, shape index: {}]   ;;  %s2600_s3 = inlined_call_operand.hbm [shape: bf16[128,128], index: 3, kind: input, shape index: {}]   ;;  %s2601_s4 = inlined_call_operand.hbm [shape: bf16[128,128], index: 4, kind: input, shape index: {}]   ;;  %s2602_s5 = inlined_call_operand.vmem [shape: f32[8,128], index: 5, kind: input, shape index: {}]   ;;  %s2603_s6 = inlined_call_operand.hbm [shape: f32[128,128], index: 6, kind: input, shape index: {}]   ;;  %s2604_s7 = inlined_call_operand.hbm [shape: bf16[2,16,128], index: 7, kind: output, shape index: {0}]   ;;  %s2605_s8 = inlined_call_operand.hbm [shape: f32[2,1,128], index: 8, kind: output, shape index: {1}]   ;;  %s2606_s9 = inlined_call_operand.hbm [shape: f32[2,1,128], index: 9, kind: output, shape index: {2}]  }
   0x1   :  { %2616 = sst [smem:[#allocation24_spill]] %s2597_s0 }
   0x2   :  { %2617 = sst [smem:[#allocation25_spill]] %s2598_s1 }
   0x3   :  { %2618 = sst [smem:[#allocation26_spill]] %s2599_s2 }
   0x4   :  { %2619 = sst [smem:[#allocation27_spill]] %s2604_s7 }
   0x5   :  { %2620 = sst [smem:[#allocation28_spill]] %s2605_s8 }
   0x6   :  { %2621 = sst [smem:[#allocation29_spill]] %s2606_s9 }
   0x7   :  { %15 = vsyncpa [#allocation4], 0 }
   0x8   :  { %17 = vsyncpa [#allocation4 + $0x1], 0 }
   0x9   :  { %18 = vsyncpa [#allocation7], 0 }
   0xa   :  { %19 = vsyncpa [#allocation10], 0 }
   0xb   :  { %20 = vsyncpa [#allocation13], 0 }
   0xc   :  { %21 = vsyncpa [#allocation5], 0 }
   0xd   :  { %23 = vsyncpa [#allocation5 + $0x1], 0 }
   0xe   :  { %24 = vsyncpa [#allocation16], 0 }
   0xf   :  { %26 = vsyncpa [#allocation16 + $0x1], 0  ;;  %s2129_s30 = smov 0   ;;  %s2131_s10 = smov 0  }
  0x10   :  { %s2133_s11 = smov 0   ;;  %s2135_s12 = smov 0  }
  0x11   :  { %s2137_s13 = smov 0   ;;  %s2139_s14 = smov 0  }
  0x12 LB: > { %s2160_s15 = sadd.s32 4294967295, %s2059_s14   ;;  %p1307_p0 = scmp.ge.s32.totalorder %s2059_s14, 1  ;;  %s2059_s14 = sphi %s2139_s14, %s32_s14   ;;  %s2055_s13 = sphi %s2137_s13, %s2654_s13   ;;  %s2051_s12 = sphi %s2135_s12, %s2653_s12   ;;  %s2047_s11 = sphi %s2133_s11, %s2652_s11   ;;  %s2043_s10 = sphi %s2131_s10, %s2651_s10   ;;  %s2039_s30 = sphi %s2129_s30, %s2650_s30  }
  0x13   : > { %p2610_p1 = scmp.eq.s32.totalorder %s2160_s15, 0  ;;  %p283_p2 = scmp.lt.s32.totalorder %s2059_s14, 3 }
  0x14   : > { %s2061_s17 = smov [#allocation6]   ;;  %s2062_s20 = smov [#allocation9]  }
  0x15   : > { %p2165_p3 = pnand %p1307_p0, %p283_p2  ;;  %s295_s18 = sshll.u32 %s2061_s17, 4  ;;  %s2169_s18 = int_to_ptr.vmem [resolvable:$true] %s295_s18 }
  0x16   : > { %s321_s21 = sshll.u32 %s2062_s20, 4  ;;  %s2063_s22 = smov [#allocation8]   ;;  %s2180_s21 = int_to_ptr.vmem [resolvable:$true] %s321_s21 }
  0x17   : > { %s2622_s16 = scalar_select %p2165_p3, 1, 0 }
  0x18   : > { %p1595_p4 = pneg %p2165_p3  ;;  %s2182_s23 = sshll.u32 %s2063_s22, 4  ;;  %s309_s23 = int_to_ptr.vmem [resolvable:$true] %s2182_s23 }
  0x19   : > { %s2624_s1 = sld [smem:[#allocation25_spill]] }
  0x1a   : > { %p2176_p6 = pnand %p1595_p4, %p2610_p1 }
  0x1c   : > { %p2192_p8 = pneg %p2176_p6 }
  0x1f   : > { %s1735_s26 = scalar_lea.hbm %s2624_s1, 1024 }
  0x20   : > { %p1736_p7 = scmp.ne.s32.totalorder %s2624_s1, %s1735_s26  ;;  %p1742_p11 = scmp.lt.u32.totalorder %s1735_s26, %s2624_s1 }
  0x22   : > { %p1738_p9 = pnand %p2192_p8, %p1736_p7 }
  0x24   : > { %p1739_p10 = pneg %p1738_p9 }
  0x26   : > { %p1744_p12 = pnand %p1742_p11, %p1739_p10 }
  0x28   : > { %1747 = shalt.err (!%p1744_p12)
}
  0x29   : > { %s1748_s22 = scalar_lea.vmem %s2169_s18, 1024  ;;  %p1756_p4 = scmp.lt.s32.totalorder %s2169_s18, %s2169_s18 }
  0x2a   : > { %p1749_p13 = scmp.ne.s32.totalorder %s2169_s18, %s1748_s22  ;;  %p1757_p5 = scmp.lt.s32.totalorder %s1748_s22, %s1748_s22 }
  0x2c   : > { %p1751_p0 = pnand %p1749_p13, %p2192_p8  ;;  %p1758_p7 = por %p1757_p5, %p1756_p4 }
  0x2e   : > { %p1752_p2 = pneg %p1751_p0 }
  0x30   : > { %p1759_p9 = pnand %p1758_p7, %p1752_p2 }
  0x32   : > { %1762 = shalt.err (!%p1759_p9)
}
  0x33   : > { %s2064_s24 = smov 64   ;;  %s2065_s25 = smov 4  }
  0x34   : > { %1598 = dma.hbm_to_vmem [thread:$0]  (!%p2176_p6), %s2624_s1, 1024, %s2169_s18, [#allocation7], %s2064_s24, %s2064_s24, %s2065_s25  }
  0x35   : > { %s1763_s20 = scalar_lea.hbm %s2600_s3, 1024 }
  0x36   : > { %p1764_p5 = scmp.ne.s32.totalorder %s2600_s3, %s1763_s20  ;;  %p1770_p12 = scmp.lt.u32.totalorder %s1763_s20, %s2600_s3 }
  0x38   : > { %p1766_p10 = pnand %p1764_p5, %p2192_p8 }
  0x3a   : > { %p1767_p11 = pneg %p1766_p10 }
  0x3c   : > { %p1772_p13 = pnand %p1770_p12, %p1767_p11 }
  0x3e   : > { %1775 = shalt.err (!%p1772_p13)
}
  0x3f   : > { %s1776_s18 = scalar_lea.vmem %s2180_s21, 1024  ;;  %p1784_p7 = scmp.lt.s32.totalorder %s2180_s21, %s2180_s21 }
  0x40   : > { %p1777_p0 = scmp.ne.s32.totalorder %s2180_s21, %s1776_s18  ;;  %p1785_p9 = scmp.lt.s32.totalorder %s1776_s18, %s1776_s18 }
  0x42   : > { %p1779_p2 = pnand %p1777_p0, %p2192_p8  ;;  %p1786_p5 = por %p1785_p9, %p1784_p7 }
  0x44   : > { %p1780_p4 = pneg %p1779_p2 }
  0x46   : > { %p1787_p10 = pnand %p1786_p5, %p1780_p4 }
  0x48   : > { %1790 = shalt.err (!%p1787_p10)
}
  0x49   : > { %1604 = dma.hbm_to_vmem [thread:$0]  (!%p2176_p6), %s2600_s3, 1024, %s2180_s21, [#allocation10], %s2064_s24, %s2064_s24, %s2065_s25  }
  0x4a   : > { %s2626_s2 = sld [smem:[#allocation26_spill]] }
  0x50   : > { %s1791_s27 = scalar_lea.hbm %s2626_s2, 1024 }
  0x51   : > { %p1792_p11 = scmp.ne.s32.totalorder %s2626_s2, %s1791_s27  ;;  %p1798_p0 = scmp.lt.u32.totalorder %s1791_s27, %s2626_s2 }
  0x53   : > { %p1794_p12 = pnand %p1792_p11, %p2192_p8 }
  0x55   : > { %p1795_p13 = pneg %p1794_p12 }
  0x57   : > { %p1800_p2 = pnand %p1798_p0, %p1795_p13 }
  0x59   : > { %1803 = shalt.err (!%p1800_p2)
}
  0x5a   : > { %s1804_s18 = scalar_lea.vmem %s309_s23, 1024  ;;  %p1812_p5 = scmp.lt.s32.totalorder %s309_s23, %s309_s23 }
  0x5b   : > { %p1805_p4 = scmp.ne.s32.totalorder %s309_s23, %s1804_s18  ;;  %p1813_p10 = scmp.lt.s32.totalorder %s1804_s18, %s1804_s18 }
  0x5d   : > { %p1807_p7 = pnand %p1805_p4, %p2192_p8  ;;  %p1814_p1 = por %p1813_p10, %p1812_p5 }
  0x5f   : > { %p1808_p9 = pneg %p1807_p7 }
  0x61   : > { %p1815_p3 = pnand %p1814_p1, %p1808_p9 }
  0x63   : > { %1818 = shalt.err (!%p1815_p3)
}
  0x64   : > { %1601 = dma.hbm_to_vmem [thread:$0]  (!%p2176_p6), %s2626_s2, 1024, %s309_s23, [#allocation7], %s2064_s24, %s2064_s24, %s2065_s25  }
  0x65   : > { %s2066_s8 = smov [#allocation11]   ;;  %s2067_s26 = smov [#allocation12]  }
  0x66   : > { %s334_s9 = sshll.u32 %s2066_s8, 4  ;;  %s350_s27 = sshll.u32 %s2067_s26, 4  ;;  %s335_s9 = int_to_ptr.vmem [resolvable:$true] %s334_s9  ;;  %s351_s27 = int_to_ptr.vmem [resolvable:$true] %s350_s27 }
  0x67   : > { %s1819_s20 = scalar_lea.hbm %s2601_s4, 1024 }
  0x68   : > { %p1820_p1 = scmp.ne.s32.totalorder %s2601_s4, %s1819_s20  ;;  %p1826_p12 = scmp.lt.u32.totalorder %s1819_s20, %s2601_s4 }
  0x6a   : > { %p1822_p3 = pnand %p1820_p1, %p2192_p8 }
  0x6c   : > { %p1823_p11 = pneg %p1822_p3 }
  0x6e   : > { %p1828_p13 = pnand %p1826_p12, %p1823_p11 }
  0x70   : > { %1831 = shalt.err (!%p1828_p13)
}
  0x71   : > { %s1832_s23 = scalar_lea.vmem %s335_s9, 1024  ;;  %p1840_p7 = scmp.lt.s32.totalorder %s335_s9, %s335_s9 }
  0x72   : > { %p1833_p0 = scmp.ne.s32.totalorder %s335_s9, %s1832_s23  ;;  %p1841_p9 = scmp.lt.s32.totalorder %s1832_s23, %s1832_s23 }
  0x74   : > { %p1835_p2 = pnand %p1833_p0, %p2192_p8  ;;  %p1842_p5 = por %p1841_p9, %p1840_p7 }
  0x76   : > { %p1836_p4 = pneg %p1835_p2 }
  0x78   : > { %p1843_p10 = pnand %p1842_p5, %p1836_p4 }
  0x7a   : > { %1846 = shalt.err (!%p1843_p10)
}
  0x7b   : > { %1607 = dma.hbm_to_vmem [thread:$0]  (!%p2176_p6), %s2601_s4, 1024, %s335_s9, [#allocation10], %s2064_s24, %s2064_s24, %s2065_s25  }
  0x7c   : > { %s1847_s28 = scalar_lea.hbm %s2603_s6, 2048 }
  0x7d   : > { %p1848_p1 = scmp.ne.s32.totalorder %s2603_s6, %s1847_s28  ;;  %p1854_p12 = scmp.lt.u32.totalorder %s1847_s28, %s2603_s6 }
  0x7f   : > { %p1850_p3 = pnand %p1848_p1, %p2192_p8 }
  0x81   : > { %p1851_p11 = pneg %p1850_p3 }
  0x83   : > { %p1856_p13 = pnand %p1854_p12, %p1851_p11 }
  0x85   : > { %1859 = shalt.err (!%p1856_p13)
}
  0x86   : > { %s1860_s21 = scalar_lea.vmem %s351_s27, 2048  ;;  %p1868_p7 = scmp.lt.s32.totalorder %s351_s27, %s351_s27 }
  0x87   : > { %p1861_p0 = scmp.ne.s32.totalorder %s351_s27, %s1860_s21  ;;  %p1869_p9 = scmp.lt.s32.totalorder %s1860_s21, %s1860_s21 }
  0x89   : > { %p1863_p2 = pnand %p1861_p0, %p2192_p8  ;;  %p1870_p5 = por %p1869_p9, %p1868_p7 }
  0x8b   : > { %p1864_p4 = pneg %p1863_p2 }
  0x8d   : > { %p1871_p10 = pnand %p1870_p5, %p1864_p4 }
  0x8f   : > { %1874 = shalt.err (!%p1871_p10)
}
  0x90   : > { %s2613_s24 = smov 128   ;;  %s2069_s29 = smov 8  }
  0x91   : > { %1610 = dma.hbm_to_vmem [thread:$0]  (!%p2176_p6), %s2603_s6, 2048, %s351_s27, [#allocation13], %s2613_s24, %s2613_s24, %s2069_s29  }
  0x92   : > { %s2612_s23 = sadd.s32 4294967294, %s2059_s14   ;;  %s44_s1 = sadd.s32 1, %s2055_s13 }
  0x93   : > { %s53_s7 = sadd.s32 1, %s2047_s11  ;;  %p46_p8 = scmp.ge.s32.totalorder %s44_s1, 2 }
  0x94   : > { %p60_p1 = scmp.ne.s32.totalorder %s2047_s11, %s2043_s10  ;;  %p61_p3 = scmp.eq.s32.totalorder %s2059_s14, 0 }
  0x95   : > { %p66_p11 = scmp.ne.s32.totalorder %s2043_s10, %s2039_s30  ;;  %s2656_s1 = smov (%p46_p8, %s44_s1), 0 }
  0x96   : > { %p2316_p12 = por %p61_p3, %p60_p1  ;;  %p2628_p13 = scmp.eq.s32.totalorder %s2160_s15, 0 }
  0x97   : > { %s48_s8 = ssub.s32 %s2055_s13, %s2656_s1  ;;  %p218_p0 = scmp.eq.s32.totalorder %s2160_s15, 1 }
  0x98   : > { %p2322_p6 = por %p2628_p13, %p66_p11  ;;  %p51_p2 = scmp.eq.s32.totalorder %s48_s8, 0 }
  0x99   : > { %p224_p4 = scmp.eq.s32.totalorder %s2612_s23, 1  ;;  %p2331_p7 = por %p218_p0, %p60_p1 }
  0x9a   : > { %p1630_p9 = scmp.lt.s32.totalorder %s2059_s14, 2  ;;  %s364_s20 = sand.u32 1, %s2047_s11  }
  0x9b   : > { %s2630_s26 = scalar_select %p2331_p7, 1, 0 }
  0x9c   : > { %s2337_s28 = scalar_select %p51_p2, %s2047_s11, %s53_s7  }
  0x9d   : > { %p2339_p5 = por %p224_p4, %p66_p11  ;;  %s1314_s22 = sshll.u32 %s364_s20, 4 }
  0x9e   : > { %s1366_s18 = sshll.u32 %s2055_s13, 8  ;;  %s2632_s0 = sld [smem:[#allocation24_spill]] }
  0x9f   : > { %s2631_s17 = scalar_select %p2339_p5, 1, 0 }
  0xa0   : > { %s368_s8 = scalar_lea.vmem [#allocation3], %s1314_s22  ;;  %p2354_p10 = pnand %p1630_p9, %p2316_p12 }
  0xa1   : > { %s377_s23 = sshll.u32 %s368_s8, 4  ;;  %s2358_s24 = scalar_lea.sflag [#allocation4], %s364_s20  ;;  %s2350_s23 = int_to_ptr.vmem [resolvable:$true] %s377_s23 }
  0xa2   : > { %p1877_p1 = pneg %p2354_p10 }
  0xa4   : > { %s2348_s9 = scalar_lea.hbm %s2632_s0, %s1366_s18  ;;  %s1880_s19 = scalar_lea.hbm %s2632_s0, 512 }
  0xa5   : > { %s1875_s21 = scalar_lea.hbm %s2348_s9, 256  ;;  %p1881_p12 = scmp.lt.u32.totalorder %s2348_s9, %s2632_s0 }
  0xa6   : > { %p1876_p8 = scmp.ne.s32.totalorder %s2348_s9, %s1875_s21  ;;  %p1882_p13 = scmp.lt.u32.totalorder %s1880_s19, %s1875_s21 }
  0xa7   : > { %p1884_p2 = scmp.lt.u32.totalorder %s1875_s21, %s2348_s9 }
  0xa8   : > { %p1878_p3 = pnand %p1877_p1, %p1876_p8  ;;  %p1883_p0 = por %p1882_p13, %p1881_p12 }
  0xaa   : > { %p1879_p11 = pneg %p1878_p3  ;;  %p1885_p4 = por %p1884_p2, %p1883_p0 }
  0xac   : > { %p1886_p9 = pnand %p1885_p4, %p1879_p11 }
  0xae   : > { %1889 = shalt.err (!%p1886_p9)
}
  0xaf   : > { %s1890_s20 = scalar_lea.vmem %s2350_s23, 256  ;;  %s2070_s22 = smov [#allocation3]  }
  0xb0   : > { %p1891_p8 = scmp.ne.s32.totalorder %s2350_s23, %s1890_s20  ;;  %s1895_s18 = sshll.u32 %s2070_s22, 4  ;;  %s1896_s18 = int_to_ptr.vmem [resolvable:$false] %s1895_s18 }
  0xb1   : > { %s1897_s25 = scalar_lea.vmem %s1896_s18, 512  ;;  %p1898_p7 = scmp.lt.s32.totalorder %s2350_s23, %s1896_s18 }
  0xb2   : > { %p1893_p3 = pnand %p1891_p8, %p1877_p1  ;;  %p1899_p12 = scmp.lt.s32.totalorder %s1897_s25, %s1890_s20 }
  0xb4   : > { %p1894_p5 = pneg %p1893_p3  ;;  %p1900_p13 = por %p1899_p12, %p1898_p7 }
  0xb6   : > { %p1901_p0 = pnand %p1900_p13, %p1894_p5 }
  0xb8   : > { %1904 = shalt.err (!%p1901_p0)
}
  0xb9   : > { %s2634_s21 = smov 128   ;;  %p2635_p1 = scmp.ne.s32.totalorder %s2622_s16, 0 }
  0xba   : > { %1614 = dma.hbm_to_vmem [thread:$0]  (!%p2354_p10), %s2348_s9, 256, %s2350_s23, %s2358_s24, %s2634_s21, %s2634_s21, %s2069_s29  }
  0xbb   : > { %389 = sbr.rel (%p2635_p1) target bundleno = 1684 (0x694), region = 48  ;;  %s2392_s19 = sand.u32 (!%p2635_p1), 1, %s2043_s10  }
  0xbc   : > { %s1318_s8 = sshll.u32 (!%p2635_p1), %s2392_s19, 4  ;;  %s392_s20 = scalar_lea.sflag (!%p2635_p1), [#allocation4], %s2392_s19 }
  0xbd   : > { %s2396_s22 = scalar_lea.vmem (!%p2635_p1), [#allocation3], %s1318_s8 }
  0xc2   : > { %2014 = dma.done.wait (%p2322_p6), %s392_s20, 256  }
  0xc3   : > { %2016 = vsyncadd (%p2322_p6), %s392_s20, 4294967040  ;;  %p2636_p7 = scmp.eq.s32.totalorder %s2160_s15, 0 }
  0xc5   : > { %2018 = dma.done.wait (%p2636_p7), [#allocation7], 2048   ;;  %p2637_p5 = pmov %p2636_p7 }
  0xc7   : > { %2020 = vsyncadd (%p2637_p5), [#allocation7], 4294965248  ;;  %p2638_p10 = pmov %p2637_p5 }
  0xc8   : > { %p2639_p11 = pmov %p2637_p5 }
  0xc9   : > { %2022 = dma.done.wait (%p2638_p10), [#allocation10], 2048  }
  0xca   : > { %2024 = vsyncadd (%p2639_p11), [#allocation10], 4294965248  ;;  %p2640_p2 = pmov %p2637_p5 }
  0xcc   : > { %2026 = dma.done.wait (%p2640_p2), [#allocation13], 2048   ;;  %p2641_p4 = pmov %p2640_p2 }
  0xcd   : > { %v2071_v0 = vmov 0.0   ;;  %vm2072_vm0 = vmmov 0   ;;  %v1699_v1 = vld [vmem:[#allocation6] sm:$0xff]   ;;  %v1700_v2 = vld [vmem:[#allocation6 + $0x8] sm:$0xff]   ;;  %v1701_v3 = vld [vmem:[#allocation6 + $0x10] sm:$0xff]   ;;  %v486_v25 = vlaneseq  ;;  %s1324_s29 = sshll.u32 %s2392_s19, 3 }
  0xce   : > { %2028 = vsyncadd (%p2641_p4), [#allocation13], 4294965248  ;;  %1428 = vmatprep.subr.bf16.mxu0 %v2071_v0  ;;  %1444 = vmatprep.mubr.msk.bf16.mxu0 %vm2072_vm0, %v2071_v0  ;;  %v1707_v4 = vld [vmem:[#allocation8] sm:$0xff]   ;;  %v1702_v5 = vld [vmem:[#allocation6 + $0x18] sm:$0xff]   ;;  %s2455_s23 = scalar_lea.vmem [#allocation14], %s1324_s29  ;;  %s451_s27 = scalar_lea.vmem [#allocation15], %s2392_s19 }
  0xcf   : > { %1448 = vmatprep.subr.bf16.mxu1 %v2071_v0  ;;  %1464 = vmatprep.mubr.msk.bf16.mxu1 %vm2072_vm0, %v2071_v0  ;;  %v1708_v6 = vld [vmem:[#allocation8 + $0x8] sm:$0xff]   ;;  %v1703_v7 = vld [vmem:[#allocation6 + $0x20] sm:$0xff]   ;;  %v1709_v8 = vld [vmem:[#allocation8 + $0x10] sm:$0xff]   ;;  %v2445_v26 = vshrl.u32 %v486_v25, 7  ;;  %vm1053_vm2 = vcmask 1040384   ;;  %s1091_s9 = sshll.u32 %s2455_s23, 4  ;;  %s2493_s9 = int_to_ptr.vmem [resolvable:$true] %s1091_s9 }
  0xd0   : > { %1429 = vmatpush3.bf16.msra.mxu0 %v1699_v1  ;;  %1449 = vmatpush3.bf16.msra.mxu1 %v1707_v4  ;;  %v1704_v9 = vld [vmem:[#allocation6 + $0x28] sm:$0xff]   ;;  %v1710_v10 = vld [vmem:[#allocation8 + $0x18] sm:$0xff]   ;;  %v1705_v11 = vld [vmem:[#allocation6 + $0x30] sm:$0xff]   ;;  %v2073_v4 = vmov 0.0|0.0   ;;  %s1072_s7 = sand.u32 1, %s2160_s15   ;;  %s2615_s18 = sshll.u32 %s2051_s12, 4 }
  0xd1   : > { %1430 = vmatprep.subr.bf16.mxu0 %v2071_v0  ;;  %1450 = vmatprep.subr.bf16.mxu1 %v2071_v0  ;;  %v1711_v12 = vld [vmem:[#allocation8 + $0x20] sm:$0xff]   ;;  %v1706_v13 = vld [vmem:[#allocation6 + $0x38] sm:$0xff]   ;;  %v1712_v16 = vld [vmem:[#allocation8 + $0x28] sm:$0xff]   ;;  %v488_v27 = vsub.s32 0, %v2445_v26  ;;  %v610_v48 = vsub.s32 1, %v2445_v26  ;;  %s2642_s8 = sld [smem:[#allocation28_spill]] }
  0xd2   : > { %v467_v14 = vld [vmem:[%s2396_s22] sm:$0xff]  ;;  %v468_v15 = vld [vmem:[%s2396_s22 + $0x8] sm:$0xff]  ;;  %s1107_s22 = sshll.u32 %s451_s27, 4  ;;  %s2495_s16 = scalar_lea.sflag [#allocation16], %s1072_s7  ;;  %s1108_s22 = int_to_ptr.vmem [resolvable:$true] %s1107_s22 }
  0xd3   : > { %v469_v17 = vpack.c.bf16 %v468_v15, %v467_v14  ;;  %v1713_v18 = vld [vmem:[#allocation8 + $0x30] sm:$0xff]   ;;  %v1714_v19 = vld [vmem:[#allocation8 + $0x38] sm:$0xff]   ;;  %v1715_v20 = vld [vmem:[#allocation9] sm:$0xff]   ;;  %s1905_s24 = scalar_lea.vmem %s1108_s22, 16  ;;  %p2643_p9 = scmp.ne.s32.totalorder %s2630_s26, 0 }
  0xd4   : > { %1431 = vmatpush3.bf16.msra.mxu0 %v1700_v2  ;;  %1451 = vmatpush3.bf16.msra.mxu1 %v1708_v6  ;;  %v1716_v21 = vld [vmem:[#allocation9 + $0x8] sm:$0xff]   ;;  %v1717_v22 = vld [vmem:[#allocation9 + $0x10] sm:$0xff]   ;;  %v1718_v23 = vld [vmem:[#allocation9 + $0x18] sm:$0xff]   ;;  %p1906_p6 = scmp.ne.s32.totalorder %s1108_s22, %s1905_s24  ;;  %s2074_s29 = smov [#allocation15]  }
  0xd5   : > { %1432 = vmatprep.subr.bf16.mxu0 %v2071_v0  ;;  %1452 = vmatprep.subr.bf16.mxu1 %v2071_v0  ;;  %v1719_v24 = vld [vmem:[#allocation9 + $0x20] sm:$0xff]   ;;  %v1720_v40 = vld [vmem:[#allocation9 + $0x28] sm:$0xff]   ;;  %v1721_v41 = vld [vmem:[#allocation9 + $0x30] sm:$0xff]   ;;  %s1909_s15 = sshll.u32 %s2074_s29, 4  ;;  %s1910_s15 = int_to_ptr.vmem [resolvable:$false] %s1909_s15 }
  0xd6   : > { %v2451_v28 = vld [vmem:[%s2602_s5] sm:$0xff]  ;;  %v1722_v42 = vld [vmem:[#allocation9 + $0x38] sm:$0xff]   ;;  %v1724_v44 = vld [vmem:[#allocation11 + $0x8] sm:$0xff]   ;;  %p1907_p8 = pnand %p1906_p6, %p2643_p9  ;;  %p1912_p12 = scmp.lt.s32.totalorder %s1108_s22, %s1910_s15 }
  0xd7   : > { %v489_v29 = vrot.slane %v2451_v28, %v488_v27  ;;  %v1723_v43 = vld [vmem:[#allocation11] sm:$0xff]   ;;  %v1725_v45 = vld [vmem:[#allocation11 + $0x10] sm:$0xff]   ;;  %v1726_v46 = vld [vmem:[#allocation11 + $0x18] sm:$0xff]   ;;  %v611_v49 = vrot.slane %v2451_v28, %v610_v48  ;;  %s2491_s20 = scalar_lea.hbm %s2642_s8, %s2615_s18 }
  0xd8   : > { %1433 = vmatpush3.bf16.msra.mxu0 %v1701_v3  ;;  %1453 = vmatpush3.bf16.msra.mxu1 %v1709_v8  ;;  %v1727_v47 = vld [vmem:[#allocation11 + $0x20] sm:$0xff]   ;;  %v1728_v61 = vld [vmem:[#allocation11 + $0x28] sm:$0xff]   ;;  %v1729_v62 = vld [vmem:[#allocation11 + $0x30] sm:$0xff]   ;;  %v724_v8 = vsub.s32 2, %v2445_v26  ;;  %p1908_p3 = pneg %p1907_p8 }
  0xd9   : > { %1434 = vmatprep.subr.bf16.mxu0 %v2071_v0  ;;  %1454 = vmatprep.subr.bf16.mxu1 %v2071_v0  ;;  %v1730_v63 = vld [vmem:[#allocation11 + $0x38] sm:$0xff]   ;;  %v964_v1 = vld [vmem:[#allocation12] sm:$0xff]  ;;  %v965_v2 = vld [vmem:[#allocation12 + $0x8] sm:$0xff] }
  0xda   : > { %v966_v3 = vld [vmem:[#allocation12 + $0x10] sm:$0xff]  ;;  %v967_v6 = vld [vmem:[#allocation12 + $0x18] sm:$0xff]  ;;  %v972_v27 = vld [vmem:[#allocation12 + $0x40] sm:$0xff] }
  0xdc   : > { %1435 = vmatpush3.bf16.msra.mxu0 %v1702_v5  ;;  %1455 = vmatpush3.bf16.msra.mxu1 %v1710_v10  ;;  %v1544_v5 = vpack.c.bf16 %v965_v2, %v964_v1 }
  0xdd   : > { %1436 = vmatprep.subr.bf16.mxu0 %v2071_v0  ;;  %1456 = vmatprep.subr.bf16.mxu1 %v2071_v0 }
  0xe0   : > { %1437 = vmatpush3.bf16.msra.mxu0 %v1703_v7  ;;  %1457 = vmatpush3.bf16.msra.mxu1 %v1711_v12  ;;  %v1547_v7 = vpack.c.bf16 %v967_v6, %v966_v3 }
  0xe1   : > { %1438 = vmatprep.subr.bf16.mxu0 %v2071_v0  ;;  %1458 = vmatprep.subr.bf16.mxu1 %v2071_v0 }
  0xe4   : > { %1439 = vmatpush3.bf16.msra.mxu0 %v1704_v9  ;;  %1459 = vmatpush3.bf16.msra.mxu1 %v1712_v16  ;;  %v725_v9 = vrot.slane %v2451_v28, %v724_v8 }
  0xe5   : > { %1440 = vmatprep.subr.bf16.mxu0 %v2071_v0  ;;  %1460 = vmatprep.subr.bf16.mxu1 %v2071_v0 }
  0xe8   : > { %1441 = vmatpush3.bf16.msra.mxu0 %v1705_v11  ;;  %1461 = vmatpush3.bf16.msra.mxu1 %v1713_v18 }
  0xe9   : > { %1442 = vmatprep.subr.bf16.mxu0 %v2071_v0  ;;  %1462 = vmatprep.subr.bf16.mxu1 %v2071_v0 }
  0xec   : > { %1443 = vmatpush3.bf16.msra.mxu0 %v1706_v13  ;;  %1463 = vmatpush3.bf16.msra.mxu1 %v1714_v19 }
  0xed   : > { %1468 = vmatprep.subr.bf16.mxu0 %v2071_v0  ;;  %1488 = vmatprep.subr.bf16.mxu1 %v2071_v0 }
  0xef   : > { %1445 = vmatmul.mubr.bf16.vlgmr.msra.gmra.mrb[0].mxu0 %v469_v17 }
  0xf0   : > { %1484 = vmatprep.mubr.msk.bf16.mxu0 %vm2072_vm0, %v2071_v0  ;;  %1469 = vmatpush3.bf16.msra.mxu0 %v1715_v20  ;;  %v968_v20 = vld [vmem:[#allocation12 + $0x20] sm:$0xff] }
  0xf1   : > { %1470 = vmatprep.subr.bf16.mxu0 %v2071_v0 }
  0xf4   : > { %1471 = vmatpush3.bf16.msra.mxu0 %v1716_v21  ;;  %v969_v21 = vld [vmem:[#allocation12 + $0x28] sm:$0xff] }
  0xf5   : > { %1472 = vmatprep.subr.bf16.mxu0 %v2071_v0 }
  0xf8   : > { %1473 = vmatpush3.bf16.msra.mxu0 %v1717_v22  ;;  %v1550_v22 = vpack.c.bf16 %v969_v21, %v968_v20 }
  0xf9   : > { %1474 = vmatprep.subr.bf16.mxu0 %v2071_v0 }
  0xfc   : > { %1475 = vmatpush3.bf16.msra.mxu0 %v1718_v23  ;;  %v970_v23 = vld [vmem:[#allocation12 + $0x30] sm:$0xff] }
  0xfd   : > { %1476 = vmatprep.subr.bf16.mxu0 %v2071_v0 }
 0x100   : > { %1477 = vmatpush3.bf16.msra.mxu0 %v1719_v24  ;;  %v971_v24 = vld [vmem:[#allocation12 + $0x38] sm:$0xff] }
 0x101   : > { %1478 = vmatprep.subr.bf16.mxu0 %v2071_v0  ;;  %v1553_v25 = vpack.c.bf16 %v971_v24, %v970_v23 }
 0x104   : > { %1479 = vmatpush3.bf16.msra.mxu0 %v1720_v40  ;;  %v838_v40 = vsub.s32 3, %v2445_v26 }
 0x105   : > { %1480 = vmatprep.subr.bf16.mxu0 %v2071_v0 }
 0x108   : > { %1481 = vmatpush3.bf16.msra.mxu0 %v1721_v41  ;;  %v839_v41 = vrot.slane %v2451_v28, %v838_v40 }
 0x109   : > { %1482 = vmatprep.subr.bf16.mxu0 %v2071_v0 }
 0x10c   : > { %1483 = vmatpush3.bf16.msra.mxu0 %v1722_v42 }
 0x10d   : > { %1543 = vmatprep.subr.bf16.mxu0 %v2073_v4 }
 0x1c2   : > { %v572_v30 = vpop.f32.mrb[0].mxu0 }
 0x1c3   : > { %v573_v31 = vadd.f32 %v572_v30, %v489_v29  ;;  %v1446_v32 = vpop.f32.mrb[1].mxu0 }
 0x1c4   : > { %v575_v33 = vpop.f32.mrb[2].mxu0  ;;  %v975_v32 = vld [vmem:[#allocation12 + $0x58] sm:$0xff] }
 0x1c5   : > { %v576_v34 = vadd.f32 %v575_v33, %v489_v29  ;;  %v1447_v35 = vpop.f32.mrb[3].mxu0  ;;  %v589_v36 = vmax.f32 %v573_v31, 0.0  ;;  %v973_v29 = vld [vmem:[#allocation12 + $0x48] sm:$0xff] }
 0x1c6   : > { %v1556_v30 = vpack.c.bf16 %v973_v29, %v972_v27  ;;  %v977_v35 = vld [vmem:[#allocation12 + $0x68] sm:$0xff] }
 0x1c7   : > { %v1373_v37 = vpack.c.bf16 %v576_v34, %v573_v31  ;;  %v590_v38 = vmax.f32 %v576_v34, 0.0  ;;  %v974_v31 = vld [vmem:[#allocation12 + $0x50] sm:$0xff]  ;;  %v976_v34 = vld [vmem:[#allocation12 + $0x60] sm:$0xff] }
 0x1c8   : > { %v1559_v33 = vpack.c.bf16 %v975_v32, %v974_v31 }
 0x1c9   : > { %1374 = vst [vmem:[%s2455_s23] sm:$0xff] %v1373_v37   ;;  %v591_v39 = vpack.c.bf16 %v590_v38, %v589_v36  ;;  %v1562_v36 = vpack.c.bf16 %v977_v35, %v976_v34  ;;  %v978_v37 = vld [vmem:[#allocation12 + $0x70] sm:$0xff]  ;;  %v979_v38 = vld [vmem:[#allocation12 + $0x78] sm:$0xff]  ;;  %s1911_s23 = scalar_lea.vmem %s1910_s15, 32 }
 0x1ca   : > { %p1913_p13 = scmp.lt.s32.totalorder %s1911_s23, %s1905_s24 }
 0x1cb   : > { %1465 = vmatmul.mubr.bf16.vlgmr.msra.gmra.mrb[0].mxu1 %v591_v39  ;;  %v1565_v39 = vpack.c.bf16 %v979_v38, %v978_v37 }
 0x1cc   : > { %1504 = vmatprep.mubr.msk.bf16.mxu1 %vm2072_vm0, %v2071_v0  ;;  %1489 = vmatpush3.bf16.msra.mxu1 %v1723_v43  ;;  %p1914_p0 = por %p1913_p13, %p1912_p12 }
 0x1cd   : > { %1490 = vmatprep.subr.bf16.mxu1 %v2071_v0 }
 0x1ce   : > { %p1915_p1 = pnand %p1914_p0, %p1908_p3 }
 0x1d0   : > { %1491 = vmatpush3.bf16.msra.mxu1 %v1724_v44 }
 0x1d1   : > { %1492 = vmatprep.subr.bf16.mxu1 %v2071_v0 }
 0x1d4   : > { %1493 = vmatpush3.bf16.msra.mxu1 %v1725_v45 }
 0x1d5   : > { %1494 = vmatprep.subr.bf16.mxu1 %v2071_v0 }
 0x1d8   : > { %1495 = vmatpush3.bf16.msra.mxu1 %v1726_v46  ;;  %v935_v46 = vadd.s32 8, %v2445_v26  ;;  %v981_v26 = vrot.slane %v2451_v28, 4 }
 0x1d9   : > { %1496 = vmatprep.subr.bf16.mxu1 %v2071_v0 }
 0x1da   : > { %vm941_vm1 = vcmp.lt.s32.totalorder %v935_v46, 10 }
 0x1dc   : > { %1497 = vmatpush3.bf16.msra.mxu1 %v1727_v47 }
 0x1dd   : > { %1498 = vmatprep.subr.bf16.mxu1 %v2071_v0 }
 0x1e0   : > { %1499 = vmatpush3.bf16.msra.mxu1 %v1728_v61 }
 0x1e1   : > { %1500 = vmatprep.subr.bf16.mxu1 %v2071_v0 }
 0x1e4   : > { %1501 = vmatpush3.bf16.msra.mxu1 %v1729_v62 }
 0x1e5   : > { %1502 = vmatprep.subr.bf16.mxu1 %v2071_v0 }
 0x1e8   : > { %1503 = vmatpush3.bf16.msra.mxu1 %v1730_v63 }
 0x29e   : > { %v694_v50 = vpop.f32.mrb[0].mxu1 }
 0x29f   : > { %v695_v51 = vadd.f32 %v694_v50, %v611_v49  ;;  %v1466_v52 = vpop.f32.mrb[1].mxu1 }
 0x2a0   : > { %v697_v53 = vpop.f32.mrb[2].mxu1 }
 0x2a1   : > { %v701_v54 = vmul.f32 0.01, %v695_v51  ;;  %v698_v55 = vadd.f32 %v697_v53, %v611_v49  ;;  %v1467_v56 = vpop.f32.mrb[3].mxu1 }
 0x2a3   : > { %v702_v57 = vmul.f32 0.01, %v698_v55  ;;  %v703_v58 = vmax.f32 %v695_v51, %v701_v54 }
 0x2a5   : > { %v704_v59 = vmax.f32 %v698_v55, %v702_v57 }
 0x2a7   : > { %v705_v60 = vpack.c.bf16 %v704_v59, %v703_v58 }
 0x2a9   : > { %1485 = vmatmul.mubr.bf16.vlgmr.msra.gmra.mrb[4].mxu0 %v705_v60 }
 0x2aa   : > { %1540 = vmatprep.mubr.msk.f32.mxu0 %vm2072_vm0, %v2071_v0  ;;  %1545 = vmatpush3.bf16.msra.mxu0 %v1544_v5 }
 0x2ab   : > { %1546 = vmatprep.subr.bf16.mxu0 %v2073_v4 }
 0x2ae   : > { %1548 = vmatpush3.bf16.msra.mxu0 %v1547_v7 }
 0x2af   : > { %1549 = vmatprep.subr.bf16.mxu0 %v2073_v4 }
 0x2b2   : > { %1551 = vmatpush3.bf16.msra.mxu0 %v1550_v22 }
 0x2b3   : > { %1552 = vmatprep.subr.bf16.mxu0 %v2073_v4 }
 0x2b6   : > { %1554 = vmatpush3.bf16.msra.mxu0 %v1553_v25 }
 0x2b7   : > { %1555 = vmatprep.subr.bf16.mxu0 %v2073_v4 }
 0x2ba   : > { %1557 = vmatpush3.bf16.msra.mxu0 %v1556_v30 }
 0x2bb   : > { %1558 = vmatprep.subr.bf16.mxu0 %v2073_v4 }
 0x2be   : > { %1560 = vmatpush3.bf16.msra.mxu0 %v1559_v33 }
 0x2bf   : > { %1561 = vmatprep.subr.bf16.mxu0 %v2073_v4 }
 0x2c2   : > { %1563 = vmatpush3.bf16.msra.mxu0 %v1562_v36 }
 0x2c3   : > { %1564 = vmatprep.subr.bf16.mxu0 %v2073_v4 }
 0x2c6   : > { %1566 = vmatpush3.bf16.msra.mxu0 %v1565_v39 }
 0x37c   : > { %v808_v10 = vpop.f32.mrb[4].mxu0 }
 0x37d   : > { %v809_v0 = vadd.f32 %v808_v10, %v725_v9  ;;  %v1486_v11 = vpop.f32.mrb[5].mxu0 }
 0x37e   : > { %v811_v12 = vpop.f32.mrb[6].mxu0 }
 0x37f   : > { %v815_v13 = vmul.f32 0.01, %v809_v0  ;;  %v812_v14 = vadd.f32 %v811_v12, %v725_v9  ;;  %v1487_v15 = vpop.f32.mrb[7].mxu0 }
 0x381   : > { %v816_v16 = vmul.f32 0.01, %v812_v14  ;;  %v817_v17 = vmax.f32 %v809_v0, %v815_v13 }
 0x383   : > { %v818_v18 = vmax.f32 %v812_v14, %v816_v16 }
 0x385   : > { %v819_v19 = vpack.c.bf16 %v818_v18, %v817_v17 }
 0x387   : > { %1505 = vmatmul.mubr.bf16.vlgmr.msra.gmra.mrb[4].mxu1 %v819_v19 }
 0x45a   : > { %v922_v42 = vpop.f32.mrb[4].mxu1 }
 0x45b   : > { %v923_v43 = vadd.f32 %v922_v42, %v839_v41  ;;  %v1506_v44 = vpop.f32.mrb[5].mxu1 }
 0x45c   : > { %v925_v45 = vpop.f32.mrb[6].mxu1 }
 0x45d   : > { %v926_v47 = vadd.f32 %v925_v45, %v839_v41  ;;  %v1507_v48 = vpop.f32.mrb[7].mxu1  ;;  %v929_v49 = vmul.f32 0.01, %v923_v43 }
 0x45f   : > { %v930_v50 = vmul.f32 0.01, %v926_v47  ;;  %v931_v52 = vmax.f32 %v923_v43, %v929_v49 }
 0x461   : > { %v932_v51 = vmax.f32 %v926_v47, %v930_v50 }
 0x463   : > { %v947_v53 = vsel %vm941_vm1, %v932_v51, 0.0 }
 0x464   : > { %v949_v54 = vadd.f32 %v947_v53, %v931_v52 }
 0x466   : > { %v956_v55 = vrot.slane %v949_v54, 4 }
 0x468   : > { %v957_v56 = vadd.f32 %v956_v55, %v949_v54 }
 0x46a   : > { %v958_v57 = vrot.slane %v957_v56, 2 }
 0x46c   : > { %v959_v58 = vadd.f32 %v958_v57, %v957_v56 }
 0x46e   : > { %v960_v59 = vrot.slane %v959_v58, 1 }
 0x470   : > { %v961_v60 = vadd.f32 %v960_v59, %v959_v58 }
 0x472   : > { %v962_v61 = vmul.f32 0.1, %v961_v60 }
 0x474   : > { %1541 = vmatmul.mubr.f32.vlgmr.msra.gmra.mrb[8].mxu0 %v962_v61  ;;  %963 = vst [vmem:[%s451_s27] sm:$0x1] %v962_v61 }
 0x547   : > { %v1049_v62 = vpop.f32.mrb[8].mxu0 }
 0x548   : > { %v1050_v63 = vadd.f32 %v1049_v62, %v981_v26  ;;  %v1542_v1 = vpop.f32.mrb[9].mxu0 }
 0x54a   : > { %v1054_v2 = vsel %vm1053_vm2, %v1050_v63, -inf }
 0x54b   : > { %1055 = vmax.xlane.f32.xlu0 %v1054_v2 }
 0x5d8   : > { %v1056_v3 = vpop.xlane.xlu0 %1055 }
 0x5d9   : > { %v2480_v4 = vsub.f32 %v1050_v63, %v1056_v3 }
 0x5db   : > { %v1058_v5 = vmul.f32 1.442695, %v2480_v4 }
 0x5dd   : > { %1731 = vpow2.f32 %v1058_v5 }
 0x5e7   : > { %v1732_v6 = vpop.eup %1731 }
 0x5e8   : > { %v1060_v7 = vsel %vm1053_vm2, %v1732_v6, 0.0 }
 0x5e9   : > { %1061 = vadd.xlane.f32.xlu0 %v1060_v7 }
 0x5ea   : > { %1918 = shalt.err (!%p1915_p1)
}
 0x5eb   : > { %s1919_s27 = scalar_lea.hbm %s2491_s20, 16  ;;  %s1923_s21 = scalar_lea.hbm %s2642_s8, 32 }
 0x5ec   : > { %p1920_p7 = scmp.ne.s32.totalorder %s2491_s20, %s1919_s27  ;;  %p1924_p11 = scmp.lt.u32.totalorder %s2491_s20, %s2642_s8 }
 0x5ed   : > { %p1925_p2 = scmp.lt.u32.totalorder %s1923_s21, %s1919_s27  ;;  %p1927_p6 = scmp.lt.u32.totalorder %s1919_s27, %s2491_s20 }
 0x5ee   : > { %p1921_p5 = pnand %p1920_p7, %p2643_p9 }
 0x5ef   : > { %p1926_p4 = por %p1925_p2, %p1924_p11 }
 0x5f0   : > { %p1922_p10 = pneg %p1921_p5 }
 0x5f1   : > { %p1928_p8 = por %p1927_p6, %p1926_p4 }
 0x5f3   : > { %p1929_p3 = pnand %p1928_p8, %p1922_p10 }
 0x5f5   : > { %1932 = shalt.err (!%p1929_p3)
}
 0x5f6   : > { %1590 = dma.vmem_to_hbm [thread:$0]  (%p2643_p9), %s1108_s22, 16, %s2491_s20, %s2495_s16  }
 0x5f7   : > { %s1369_s24 = sshll.u32 %s2051_s12, 7  ;;  %s2644_s25 = sld [smem:[#allocation27_spill]] }
 0x5f8   : > { %s1068_s27 = scalar_lea.sflag [#allocation5], %s2392_s19  ;;  %s1933_s29 = scalar_lea.vmem %s2493_s9, 128 }
 0x5f9   : > { %p1934_p12 = scmp.ne.s32.totalorder %s2493_s9, %s1933_s29  ;;  %s2075_s15 = smov [#allocation14]  }
 0x5fa   : > { %s1937_s18 = sshll.u32 %s2075_s15, 4  ;;  %s1938_s18 = int_to_ptr.vmem [resolvable:$false] %s1937_s18 }
 0x5fb   : > { %p1935_p13 = pnand %p1934_p12, %p2643_p9  ;;  %s1939_s0 = scalar_lea.vmem %s1938_s18, 256 }
 0x5fc   : > { %p1940_p1 = scmp.lt.s32.totalorder %s2493_s9, %s1938_s18  ;;  %p1941_p7 = scmp.lt.s32.totalorder %s1939_s0, %s1933_s29 }
 0x5fd   : > { %s2519_s21 = scalar_lea.hbm %s2644_s25, %s1369_s24  ;;  %p1936_p0 = pneg %p1935_p13 }
 0x5fe   : > { %p1942_p5 = por %p1941_p7, %p1940_p1 }
 0x600   : > { %p1943_p10 = pnand %p1942_p5, %p1936_p0 }
 0x602   : > { %1946 = shalt.err (!%p1943_p10)
}
 0x603   : > { %s1947_s20 = scalar_lea.hbm %s2519_s21, 128  ;;  %s1951_s23 = scalar_lea.hbm %s2644_s25, 256 }
 0x604   : > { %p1948_p11 = scmp.ne.s32.totalorder %s2519_s21, %s1947_s20  ;;  %p1952_p6 = scmp.lt.u32.totalorder %s2519_s21, %s2644_s25 }
 0x605   : > { %p1953_p8 = scmp.lt.u32.totalorder %s1951_s23, %s1947_s20  ;;  %p1955_p12 = scmp.lt.u32.totalorder %s1947_s20, %s2519_s21 }
 0x606   : > { %p1949_p2 = pnand %p1948_p11, %p2643_p9 }
 0x607   : > { %p1954_p3 = por %p1953_p8, %p1952_p6 }
 0x608   : > { %p1950_p4 = pneg %p1949_p2 }
 0x609   : > { %p1956_p13 = por %p1955_p12, %p1954_p3 }
 0x60b   : > { %p1957_p0 = pnand %p1956_p13, %p1950_p4 }
 0x60d   : > { %1960 = shalt.err (!%p1957_p0)
}
 0x60e   : > { %s2076_s0 = smov 64   ;;  %s2077_s29 = smov 4  }
 0x60f   : > { %1589 = dma.vmem_to_hbm [thread:$0]  (%p2643_p9), %s2493_s9, 128, %s2519_s21, %s1068_s27, %s2076_s0, %s2076_s0, %s2077_s29  }
 0x610   : > { %s457_s15 = scalar_lea.vmem [#allocation17], %s2392_s19  ;;  %s2645_s22 = sshll.u32 %s2051_s12, 4 }
 0x611   : > { %s1120_s20 = sshll.u32 %s457_s15, 4  ;;  %s2646_s7 = sld [smem:[#allocation29_spill]]  ;;  %s1121_s20 = int_to_ptr.vmem [resolvable:$true] %s1120_s20 }
 0x612   : > { %s1961_s2 = scalar_lea.vmem %s1121_s20, 16  ;;  %s2078_s9 = smov [#allocation17]  }
 0x613   : > { %p1962_p1 = scmp.ne.s32.totalorder %s1121_s20, %s1961_s2  ;;  %s1965_s21 = sshll.u32 %s2078_s9, 4  ;;  %s1966_s21 = int_to_ptr.vmem [resolvable:$false] %s1965_s21 }
 0x614   : > { %s1967_s19 = scalar_lea.vmem %s1966_s21, 32  ;;  %p1968_p10 = scmp.lt.s32.totalorder %s1121_s20, %s1966_s21 }
 0x615   : > { %p1963_p7 = pnand %p1962_p1, %p2643_p9  ;;  %p1969_p11 = scmp.lt.s32.totalorder %s1967_s19, %s1961_s2 }
 0x617   : > { %s2552_s18 = scalar_lea.hbm %s2646_s7, %s2645_s22  ;;  %p1964_p5 = pneg %p1963_p7 }
 0x618   : > { %p1970_p2 = por %p1969_p11, %p1968_p10 }
 0x61a   : > { %p1971_p4 = pnand %p1970_p2, %p1964_p5 }
 0x676   : > { %v1062_v28 = vpop.xlane.xlu0 %1061 }
 0x677   : > { %1733 = vlog2.f32 %v1062_v28 }
 0x681   : > { %v1734_v8 = vpop.eup %1733 }
 0x682   : > { %v1064_v9 = vmul.f32 0.6931472, %v1734_v8 }
 0x684   : > { %v1065_v10 = vsub.f32 %v2480_v4, %v1064_v9 }
 0x686   : > { %1066 = vst [vmem:[%s457_s15] sm:$0x1] %v1065_v10 }
 0x687   : > { %1974 = shalt.err (!%p1971_p4)
}
 0x688   : > { %s1975_s12 = scalar_lea.hbm %s2552_s18, 16  ;;  %s1979_s29 = scalar_lea.hbm %s2646_s7, 32 }
 0x689   : > { %p1976_p6 = scmp.ne.s32.totalorder %s2552_s18, %s1975_s12  ;;  %p1980_p12 = scmp.lt.u32.totalorder %s2552_s18, %s2646_s7 }
 0x68a   : > { %p1981_p13 = scmp.lt.u32.totalorder %s1979_s29, %s1975_s12  ;;  %p1983_p1 = scmp.lt.u32.totalorder %s1975_s12, %s2552_s18 }
 0x68b   : > { %p1977_p8 = pnand %p1976_p6, %p2643_p9 }
 0x68c   : > { %p1982_p0 = por %p1981_p13, %p1980_p12 }
 0x68d   : > { %p1978_p3 = pneg %p1977_p8 }
 0x68e   : > { %p1984_p7 = por %p1983_p1, %p1982_p0 }
 0x690   : > { %p1985_p5 = pnand %p1984_p7, %p1978_p3 }
 0x692   : > { %1988 = shalt.err (!%p1985_p5)
}
 0x693   : > { %1591 = dma.vmem_to_hbm [thread:$0]  (%p2643_p9), %s1121_s20, 16, %s2552_s18, %s2495_s16  }
 0x694 PF: > { %s1132_s2 = sand.u32 1, %s2039_s30   ;;  %p2647_p10 = scmp.ne.s32.totalorder %s2631_s17, 0 }
 0x695   : > { %p2648_p11 = scmp.ge.s32.totalorder %s2059_s14, 2  ;;  %s1133_s24 = scalar_lea.sflag [#allocation5], %s1132_s2 }
 0x697   : > { %p1616_p2 = pnand %p2648_p11, %p2647_p10 }
 0x699   : > { %2030 = dma.done.wait (!%p1616_p2), %s1133_s24, 128  }
 0x69a   : > { %2032 = vsyncadd (!%p1616_p2), %s1133_s24, 4294967168  ;;  %s2649_s23 = sadd.s32 4294967294, %s2059_s14  }
 0x69b   : > { %s1141_s9 = sand.u32 1, %s2649_s23  }
 0x69c   : > { %s1142_s21 = scalar_lea.sflag [#allocation16], %s1141_s9 }
 0x69d   : > { %2034 = dma.done.wait (!%p1616_p2), %s1142_s21, 32  }
 0x69e   : > { %2036 = vsyncadd (!%p1616_p2), %s1142_s21, 4294967264  ;;  %s32_s14 = sadd.s32 1, %s2059_s14   ;;  %s2650_s30 = smov %s2043_s10 }
 0x69f   : > { %p29_p9 = scmp.ge.s32.totalorder %s32_s14, 4   ;;  %s2651_s10 = smov %s2047_s11 }
 0x6a0   : > { %s2652_s11 = smov %s2337_s28  ;;  %s2653_s12 = smov %s2055_s13 }
 0x6a1   : > { %s2654_s13 = smov %s2656_s1  ;;  %31 = sbr.rel (!%p29_p9) target bundleno = 18 (0x12), region = 153 }
 0x6a8   :  { %1154 = vsyncpa [#allocation4], 1 }
 0x6a9   :  { %1156 = vsyncpa [#allocation4 + $0x1], 1 }
 0x6aa   :  { %1157 = vsyncpa [#allocation7], 1 }
 0x6ab   :  { %1158 = vsyncpa [#allocation10], 1 }
 0x6ac   :  { %1159 = vsyncpa [#allocation13], 1 }
 0x6ad   :  { %1160 = vsyncpa [#allocation5], 1 }
 0x6ae   :  { %1162 = vsyncpa [#allocation5 + $0x1], 1 }
 0x6af   :  { %1163 = vsyncpa [#allocation16], 1 }
 0x6b0   :  { %1165 = vsyncpa [#allocation16 + $0x1], 1 }

</bundles_post_ra>
